<compile_context>
chip_gen: v7x
topology: tpu7x:2x2x1
jax: 0.10.0
libtpu: 0.0.40
codegen_flags: <defaults>
</compile_context>

<pallas_src>
import functools

import jax
import jax.numpy as jnp
from jax import lax
from jax.experimental import pallas as pl
from jax.experimental.pallas import tpu as pltpu

LANE = 128             # lane width (minor dim)
SUB = 8                # f32 sublane tile rows
MAX_BLOCK_ROWS = 1024  # rows per grid step (512 KiB / input / pipeline buffer)
NCORES = 2             # leading "parallel" grid axis (both TCs on v7x)


def _round_up(a, b):
    return ((a + b - 1) // b) * b


def _focal_loss_kernel(x_ref, t_ref, o_ref, *, gamma, numel, block_rows,
                       blocks_per_core, needs_mask, mask_from_block):
    c = pl.program_id(0)   # core axis ("parallel")
    i = pl.program_id(1)   # reduction axis ("arbitrary")

    # o_ref (8,128) is the per-core partial-sum accumulator: its output block
    # index depends only on c, so it stays resident across the i axis.
    @pl.when(i == 0)
    def _():
        o_ref[...] = jnp.zeros_like(o_ref)

    x = x_ref[...].astype(jnp.float32)
    t = t_ref[...].astype(jnp.float32)

    # loss = x - x*t + softplus(-x); stable softplus(-x) = max(-x,0) + log(1+exp(-|x|))
    loss = x - x * t + jnp.maximum(-x, 0.0) + jnp.log(1.0 + jnp.exp(-jnp.abs(x)))

    # invprobs = logsigmoid(-x*(2t-1)) = -softplus(x*(2t-1))
    z = -x * (t * 2.0 - 1.0)
    invprobs = -(jnp.maximum(-z, 0.0) + jnp.log(1.0 + jnp.exp(-jnp.abs(z))))

    focal = jnp.exp(invprobs * gamma) * loss

    def _accumulate(vals):
        # (block_rows,128) -> (block_rows//8, 8, 128), sum over the leading
        # axis: pure VPU adds into the resident (8,128) accumulator.
        o_ref[...] += vals.reshape(-1, SUB, LANE).sum(axis=0)

    if needs_mask:
        gb = c * blocks_per_core + i   # global block index

        @pl.when(gb < mask_from_block)       # fully-valid interior blocks
        def _():
            _accumulate(focal)

        @pl.when(gb >= mask_from_block)      # block(s) that may contain padding
        def _():
            base = gb * (block_rows * LANE)
            local = (lax.broadcasted_iota(jnp.int32, focal.shape, 0) * LANE
                     + lax.broadcasted_iota(jnp.int32, focal.shape, 1))
            _accumulate(jnp.where(local < (numel - base), focal, 0.0))
    else:
        _accumulate(focal)


def focal_loss(x, target, gamma):
    if x.shape != target.shape:
        raise ValueError(
            "Target size ({}) must be the same as input size ({})".format(
                target.shape, x.shape))

    numel = int(x.size)
    rows = pl.cdiv(numel, LANE)
    # Block rows: multiple of 8 sublanes, sized so both cores get work, capped
    # so 2 inputs x 2 pipeline buffers stay far below every generation's VMEM.
    block_rows = min(MAX_BLOCK_ROWS,
                     _round_up(max(pl.cdiv(rows, NCORES), SUB), SUB))
    blocks_per_core = pl.cdiv(rows, NCORES * block_rows)
    rows_pad = NCORES * blocks_per_core * block_rows
    total = rows_pad * LANE

    def to_slab(a):
        if a.dtype == jnp.bool_:
            a = a.astype(jnp.int8)        # DMA-friendly; cast to f32 in-kernel
        flat = a.reshape(-1)              # keep native dtype, cast in-kernel
        if total != numel:
            flat = jnp.pad(flat, (0, total - numel))   # tail-only pad
        return flat.reshape(rows_pad, LANE)

    xs = to_slab(x)
    ts = to_slab(target)

    needs_mask = total != numel
    mask_from_block = numel // (block_rows * LANE)  # first block holding padding

    kernel = functools.partial(
        _focal_loss_kernel, gamma=float(gamma), numel=numel,
        block_rows=block_rows, blocks_per_core=blocks_per_core,
        needs_mask=needs_mask, mask_from_block=mask_from_block)

    partials = pl.pallas_call(
        kernel,
        out_shape=jax.ShapeDtypeStruct((NCORES * SUB, LANE), jnp.float32),
        grid=(NCORES, blocks_per_core),
        in_specs=[
            pl.BlockSpec((block_rows, LANE),
                         lambda c, i: (c * blocks_per_core + i, 0)),
            pl.BlockSpec((block_rows, LANE),
                         lambda c, i: (c * blocks_per_core + i, 0)),
        ],
        out_specs=pl.BlockSpec((SUB, LANE), lambda c, i: (c, 0)),
        compiler_params=pltpu.CompilerParams(
            dimension_semantics=("parallel", "arbitrary")),
    )(xs, ts)

    return jnp.sum(partials) / jnp.float32(numel)


def focal_loss_ref(x, target, gamma):
    x = x.astype(jnp.float32)
    t = target.astype(jnp.float32)
    max_val = jnp.maximum(-x, 0.0)
    loss = x - x * t + max_val + jnp.log(jnp.exp(-max_val) + jnp.exp(-x - max_val))
    invprobs = jax.nn.log_sigmoid(-x * (t * 2.0 - 1.0))
    loss = jnp.exp(invprobs * gamma) * loss
    return jnp.mean(loss)


if __name__ == "__main__":
    key = jax.random.PRNGKey(0)
    k1, k2 = jax.random.split(key)

    gamma = 2.0  # FocalLoss(gamma=2.0)
    # NCHW logits and binary targets, same shape
    x = jax.random.normal(k1, (2, 4, 16, 16), dtype=jnp.float32) * 2.0
    target = (jax.random.uniform(k2, (2, 4, 16, 16)) > 0.5).astype(jnp.float32)

    out = jax.block_until_ready(focal_loss(x, target, gamma))
    ref = jax.block_until_ready(focal_loss_ref(x, target, gamma))
    assert jnp.allclose(out, ref, rtol=1e-5, atol=1e-5), (out, ref)

    print("KERNEL_OK")
</pallas_src>

<mosaic_0001>
module attributes {stable_mosaic.version = 11 : i64} {
  func.func @_focal_loss_kernel(%arg0: i32, %arg1: i32, %arg2: memref<8x128xf32, #tpu.memory_space<vmem>>, %arg3: memref<8x128xf32, #tpu.memory_space<vmem>>, %arg4: memref<8x128xf32, #tpu.memory_space<vmem>>) attributes {dimension_semantics = [#tpu.dimension_semantics<parallel>, #tpu.dimension_semantics<arbitrary>], iteration_bounds = array<i64: 2, 1>, scalar_prefetch = 0 : i64, scratch_operands = 0 : i64, tpu.core_type = #tpu.core_type<tc>, window_params = [{transform_indices = @transform_0, window_bounds = array<i64: 8, 128>}, {transform_indices = @transform_1, window_bounds = array<i64: 8, 128>}, {transform_indices = @transform_2, window_bounds = array<i64: 8, 128>}]} {
    %c0_i32 = arith.constant 0 : i32
    %0 = arith.cmpi eq, %arg1, %c0_i32 : i32
    %1 = arith.extui %0 : i1 to i32
    %c0_i32_0 = arith.constant 0 : i32
    %2 = arith.cmpi ne, %1, %c0_i32_0 : i32
    scf.if %2 {
      %cst_21 = arith.constant 0.000000e+00 : f32
      %50 = vector.broadcast %cst_21 : f32 to vector<8x128xf32>
      %c0_22 = arith.constant 0 : index
      %c0_23 = arith.constant 0 : index
      %51 = vector.load %arg4[%c0_22, %c0_23] : memref<8x128xf32, #tpu.memory_space<vmem>>, vector<8x128xf32>
      tpu.vector_store %arg4[%c0_22, %c0_23], %50 {strides = array<i32>} : memref<8x128xf32, #tpu.memory_space<vmem>>, vector<8x128xf32>,
    } else {
    }
    %c0 = arith.constant 0 : index
    %c0_1 = arith.constant 0 : index
    %3 = vector.load %arg2[%c0, %c0_1] : memref<8x128xf32, #tpu.memory_space<vmem>>, vector<8x128xf32>
    %c0_2 = arith.constant 0 : index
    %c0_3 = arith.constant 0 : index
    %4 = vector.load %arg3[%c0_2, %c0_3] : memref<8x128xf32, #tpu.memory_space<vmem>>, vector<8x128xf32>
    %5 = arith.mulf %3, %4 : vector<8x128xf32>
    %6 = arith.subf %3, %5 : vector<8x128xf32>
    %cst = arith.constant 0.000000e+00 : f32
    %7 = vector.broadcast %cst : f32 to vector<8x128xf32>
    %8 = arith.subf %7, %3 : vector<8x128xf32>
    %cst_4 = arith.constant 0.000000e+00 : f32
    %9 = vector.broadcast %cst_4 : f32 to vector<8x128xf32>
    %10 = arith.maximumf %8, %9 : vector<8x128xf32>
    %11 = arith.addf %6, %10 : vector<8x128xf32>
    %12 = math.absf %3 : vector<8x128xf32>
    %cst_5 = arith.constant 0.000000e+00 : f32
    %13 = vector.broadcast %cst_5 : f32 to vector<8x128xf32>
    %14 = arith.subf %13, %12 : vector<8x128xf32>
    %15 = math.exp %14 : vector<8x128xf32>
    %cst_6 = arith.constant 1.000000e+00 : f32
    %16 = vector.broadcast %cst_6 : f32 to vector<8x128xf32>
    %17 = arith.addf %16, %15 : vector<8x128xf32>
    %18 = math.log %17 : vector<8x128xf32>
    %19 = arith.addf %11, %18 : vector<8x128xf32>
    %cst_7 = arith.constant 0.000000e+00 : f32
    %20 = vector.broadcast %cst_7 : f32 to vector<8x128xf32>
    %21 = arith.subf %20, %3 : vector<8x128xf32>
    %cst_8 = arith.constant 2.000000e+00 : f32
    %22 = vector.broadcast %cst_8 : f32 to vector<8x128xf32>
    %23 = arith.mulf %4, %22 : vector<8x128xf32>
    %cst_9 = arith.constant 1.000000e+00 : f32
    %24 = vector.broadcast %cst_9 : f32 to vector<8x128xf32>
    %25 = arith.subf %23, %24 : vector<8x128xf32>
    %26 = arith.mulf %21, %25 : vector<8x128xf32>
    %cst_10 = arith.constant 0.000000e+00 : f32
    %27 = vector.broadcast %cst_10 : f32 to vector<8x128xf32>
    %28 = arith.subf %27, %26 : vector<8x128xf32>
    %cst_11 = arith.constant 0.000000e+00 : f32
    %29 = vector.broadcast %cst_11 : f32 to vector<8x128xf32>
    %30 = arith.maximumf %28, %29 : vector<8x128xf32>
    %31 = math.absf %26 : vector<8x128xf32>
    %cst_12 = arith.constant 0.000000e+00 : f32
    %32 = vector.broadcast %cst_12 : f32 to vector<8x128xf32>
    %33 = arith.subf %32, %31 : vector<8x128xf32>
    %34 = math.exp %33 : vector<8x128xf32>
    %cst_13 = arith.constant 1.000000e+00 : f32
    %35 = vector.broadcast %cst_13 : f32 to vector<8x128xf32>
    %36 = arith.addf %35, %34 : vector<8x128xf32>
    %37 = math.log %36 : vector<8x128xf32>
    %38 = arith.addf %30, %37 : vector<8x128xf32>
    %cst_14 = arith.constant 0.000000e+00 : f32
    %39 = vector.broadcast %cst_14 : f32 to vector<8x128xf32>
    %40 = arith.subf %39, %38 : vector<8x128xf32>
    %cst_15 = arith.constant 2.000000e+00 : f32
    %41 = vector.broadcast %cst_15 : f32 to vector<8x128xf32>
    %42 = arith.mulf %40, %41 : vector<8x128xf32>
    %43 = math.exp %42 : vector<8x128xf32>
    %44 = arith.mulf %43, %19 : vector<8x128xf32>
    %c0_16 = arith.constant 0 : index
    %c0_17 = arith.constant 0 : index
    %45 = vector.load %arg4[%c0_16, %c0_17] : memref<8x128xf32, #tpu.memory_space<vmem>>, vector<8x128xf32>
    %46 = vector.shape_cast %44 : vector<8x128xf32> to vector<1x8x128xf32>
    %cst_18 = arith.constant dense<0.000000e+00> : vector<8x128xf32>
    %47 = vector.multi_reduction <add>, %46, %cst_18 [0] : vector<1x8x128xf32> to vector<8x128xf32>
    %48 = arith.addf %45, %47 : vector<8x128xf32>
    %c0_19 = arith.constant 0 : index
    %c0_20 = arith.constant 0 : index
    %49 = vector.load %arg4[%c0_19, %c0_20] : memref<8x128xf32, #tpu.memory_space<vmem>>, vector<8x128xf32>
    tpu.vector_store %arg4[%c0_19, %c0_20], %48 {strides = array<i32>} : memref<8x128xf32, #tpu.memory_space<vmem>>, vector<8x128xf32>,
    return
  }
  func.func @transform_0(%arg0: i32, %arg1: i32) -> (i32, i32) {
    %c1_i32 = arith.constant 1 : i32
    %0 = arith.muli %arg0, %c1_i32 : i32
    %1 = arith.addi %0, %arg1 : i32
    %c0_i32 = arith.constant 0 : i32
    %c0_i32_0 = arith.constant 0 : i32
    return %1, %c0_i32 : i32, i32
  }
  func.func @transform_1(%arg0: i32, %arg1: i32) -> (i32, i32) {
    %c1_i32 = arith.constant 1 : i32
    %0 = arith.muli %arg0, %c1_i32 : i32
    %1 = arith.addi %0, %arg1 : i32
    %c0_i32 = arith.constant 0 : i32
    %c0_i32_0 = arith.constant 0 : i32
    return %1, %c0_i32 : i32, i32
  }
  func.func @transform_2(%arg0: i32, %arg1: i32) -> (i32, i32) {
    %c0_i32 = arith.constant 0 : i32
    %c0_i32_0 = arith.constant 0 : i32
    return %arg0, %c0_i32 : i32, i32
  }
}

</mosaic_0001>

<bundles_post_ra>
// kernel: tpu_custom_call.1
= control target key start
LH: loop header
LB: loop body
LE: loop exit
PB: predicated region body
PF: predicated region fallthrough
CT: control target
= control target key end

     0   :  { %7 = vsyncpa [#allocation3], 0  ;;  %s861_s0 = inlined_call_operand.hbm [shape: f32[16,128], index: 0, kind: input, shape index: {}]   ;;  %s862_s1 = inlined_call_operand.hbm [shape: f32[16,128], index: 1, kind: input, shape index: {}]   ;;  %s863_s2 = inlined_call_operand.hbm [shape: f32[16,128], index: 2, kind: output, shape index: {}]  }
   0x1   :  { %9 = vsyncpa [#allocation3 + $0x1], 0 }
   0x2   :  { %10 = vsyncpa [#allocation6], 0 }
   0x3   :  { %12 = vsyncpa [#allocation6 + $0x1], 0 }
   0x4   :  { %13 = vsyncpa [#allocation4], 0 }
   0x5   :  { %15 = vsyncpa [#allocation4 + $0x1], 0  ;;  %s636_s9 = smov 0   ;;  %s638_s10 = smov 0  }
   0x6   :  { %s640_s11 = smov 0   ;;  %s642_s12 = smov 0  }
   0x7   :  { %s644_s13 = smov 0   ;;  %s646_s14 = smov 0  }
   0x8 LB: > { %s375_s15 = sadd.s32 4294967295, %s616_s14   ;;  %s376_s16 = sadd.s32 4294967294, %s616_s14   ;;  %s616_s14 = sphi %s646_s14, %s21_s14   ;;  %s612_s13 = sphi %s644_s13, %s883_s13   ;;  %s608_s12 = sphi %s642_s12, %s882_s12   ;;  %s604_s11 = sphi %s640_s11, %s881_s11   ;;  %s600_s10 = sphi %s638_s10, %s880_s10   ;;  %s596_s9 = sphi %s636_s9, %s879_s9  }
   0x9   : > { %s33_s17 = sadd.s32 1, %s612_s13  ;;  %s42_s18 = sadd.s32 1, %s604_s11 }
   0xa   : > { %p35_p0 = scmp.ge.s32.totalorder %s33_s17, 2  ;;  %p49_p1 = scmp.ne.s32.totalorder %s604_s11, %s600_s10 }
   0xb   : > { %p50_p2 = scmp.eq.s32.totalorder %s616_s14, 0  ;;  %p55_p3 = scmp.ne.s32.totalorder %s600_s10, %s596_s9 }
   0xc   : > { %s885_s17 = smov (%p35_p0, %s33_s17), 0  ;;  %p56_p5 = scmp.eq.s32.totalorder %s375_s15, 0 }
   0xd   : > { %p677_p4 = por %p50_p2, %p49_p1  ;;  %s39_s20 = ssub.s32 %s612_s13, %s885_s17 }
   0xe   : > { %p107_p6 = scmp.eq.s32.totalorder %s375_s15, 1  ;;  %p40_p7 = scmp.eq.s32.totalorder %s39_s20, 0 }
   0xf   : > { %p683_p8 = por %p56_p5, %p55_p3  ;;  %p113_p10 = scmp.eq.s32.totalorder %s376_s16, 1 }
  0x10   : > { %p687_p9 = por %p107_p6, %p49_p1  ;;  %p409_p13 = scmp.lt.s32.totalorder %s616_s14, 2 }
  0x11   : > { %s867_s21 = scalar_select %p683_p8, 1, 0 }
  0x12   : > { %s868_s22 = scalar_select %p687_p9, 1, 0 }
  0x13   : > { %s692_s23 = scalar_select %p40_p7, %s604_s11, %s42_s18  }
  0x14   : > { %p694_p11 = por %p113_p10, %p55_p3  ;;  %s701_s25 = sand.u32 1, %s604_s11  }
  0x15   : > { %s379_s26 = sshll.u32 %s701_s25, 3  ;;  %s380_s27 = sshll.u32 %s612_s13, 7 }
  0x16   : > { %s869_s24 = scalar_select %p694_p11, 1, 0 }
  0x17   : > { %s710_s30 = scalar_lea.hbm %s861_s0, %s380_s27  ;;  %s137_s3 = scalar_lea.vmem [#allocation2], %s379_s26 }
  0x18   : > { %s145_s4 = sshll.u32 %s137_s3, 4  ;;  %p718_p0 = pnand %p409_p13, %p677_p4  ;;  %s714_s4 = int_to_ptr.vmem [resolvable:$true] %s145_s4 }
  0x19   : > { %s134_s6 = scalar_lea.sflag [#allocation3], %s701_s25  ;;  %s470_s7 = scalar_lea.hbm %s710_s30, 128 }
  0x1a   : > { %p471_p3 = scmp.ne.s32.totalorder %s710_s30, %s470_s7  ;;  %p472_p5 = pneg %p718_p0 }
  0x1b   : > { %s475_s16 = scalar_lea.hbm %s861_s0, 256  ;;  %p476_p4 = scmp.lt.u32.totalorder %s710_s30, %s861_s0 }
  0x1c   : > { %p473_p6 = pnand %p472_p5, %p471_p3  ;;  %p477_p10 = scmp.lt.u32.totalorder %s475_s16, %s470_s7 }
  0x1d   : > { %p479_p12 = scmp.lt.u32.totalorder %s470_s7, %s710_s30 }
  0x1e   : > { %p474_p7 = pneg %p473_p6  ;;  %p478_p13 = por %p477_p10, %p476_p4 }
  0x20   : > { %p480_p1 = por %p479_p12, %p478_p13 }
  0x22   : > { %p481_p2 = pnand %p480_p1, %p474_p7 }
  0x24   : > { %484 = shalt.err (!%p481_p2)
}
  0x25   : > { %s485_s20 = scalar_lea.vmem %s714_s4, 128  ;;  %s618_s28 = smov [#allocation2]  }
  0x26   : > { %p486_p3 = scmp.ne.s32.totalorder %s714_s4, %s485_s20  ;;  %s490_s29 = sshll.u32 %s618_s28, 4  ;;  %s491_s29 = int_to_ptr.vmem [resolvable:$false] %s490_s29 }
  0x27   : > { %s492_s3 = scalar_lea.vmem %s491_s29, 256  ;;  %p493_p9 = scmp.lt.s32.totalorder %s714_s4, %s491_s29 }
  0x28   : > { %p488_p6 = pnand %p486_p3, %p472_p5  ;;  %p494_p4 = scmp.lt.s32.totalorder %s492_s3, %s485_s20 }
  0x2a   : > { %p489_p11 = pneg %p488_p6  ;;  %p495_p10 = por %p494_p4, %p493_p9 }
  0x2c   : > { %p496_p12 = pnand %p495_p10, %p489_p11 }
  0x2e   : > { %499 = shalt.err (!%p496_p12)
}
  0x2f   : > { %401 = dma.hbm_to_vmem [thread:$0]  (!%p718_p0), %s710_s30, 128, %s714_s4, %s134_s6  }
  0x30   : > { %p871_p1 = scmp.lt.s32.totalorder %s616_s14, 3  ;;  %p872_p2 = scmp.ge.s32.totalorder %s616_s14, 1 }
  0x31   : > { %s763_s16 = scalar_lea.hbm %s862_s1, %s380_s27  ;;  %s156_s18 = scalar_lea.vmem [#allocation5], %s379_s26 }
  0x32   : > { %p754_p7 = pnand %p872_p2, %p871_p1  ;;  %s164_s19 = sshll.u32 %s156_s18, 4  ;;  %s165_s19 = int_to_ptr.vmem [resolvable:$true] %s164_s19 }
  0x33   : > { %s153_s30 = scalar_lea.sflag [#allocation6], %s701_s25  ;;  %s500_s4 = scalar_lea.hbm %s763_s16, 128 }
  0x34   : > { %s873_s7 = scalar_select %p754_p7, 1, 0 }
  0x35   : > { %p501_p9 = scmp.ne.s32.totalorder %s763_s16, %s500_s4  ;;  %s505_s27 = scalar_lea.hbm %s862_s1, 256 }
  0x36   : > { %p506_p3 = scmp.lt.u32.totalorder %s763_s16, %s862_s1  ;;  %p507_p6 = scmp.lt.u32.totalorder %s505_s27, %s500_s4 }
  0x37   : > { %p503_p11 = pnand %p501_p9, %p472_p5  ;;  %p509_p10 = scmp.lt.u32.totalorder %s500_s4, %s763_s16 }
  0x38   : > { %p508_p4 = por %p507_p6, %p506_p3 }
  0x39   : > { %p504_p13 = pneg %p503_p11 }
  0x3a   : > { %p510_p12 = por %p509_p10, %p508_p4 }
  0x3c   : > { %p511_p1 = pnand %p510_p12, %p504_p13 }
  0x3e   : > { %514 = shalt.err (!%p511_p1)
}
  0x3f   : > { %s515_s25 = scalar_lea.vmem %s165_s19, 128  ;;  %s619_s26 = smov [#allocation5]  }
  0x40   : > { %p516_p2 = scmp.ne.s32.totalorder %s165_s19, %s515_s25  ;;  %s520_s3 = sshll.u32 %s619_s26, 4  ;;  %s521_s3 = int_to_ptr.vmem [resolvable:$false] %s520_s3 }
  0x41   : > { %s522_s8 = scalar_lea.vmem %s521_s3, 256  ;;  %p523_p8 = scmp.lt.s32.totalorder %s165_s19, %s521_s3 }
  0x42   : > { %p518_p9 = pnand %p516_p2, %p472_p5  ;;  %p524_p7 = scmp.lt.s32.totalorder %s522_s8, %s515_s25 }
  0x44   : > { %p519_p11 = pneg %p518_p9  ;;  %p525_p3 = por %p524_p7, %p523_p8 }
  0x46   : > { %p526_p6 = pnand %p525_p3, %p519_p11 }
  0x48   : > { %529 = shalt.err (!%p526_p6)
}
  0x49   : > { %404 = dma.hbm_to_vmem [thread:$0]  (!%p718_p0), %s763_s16, 128, %s165_s19, %s153_s30  }
  0x4a   : > { %p874_p13 = scmp.ne.s32.totalorder %s873_s7, 0 }
  0x4b   : > { %s790_s15 = sand.u32 (!%p874_p13), 1, %s600_s10   ;;  %p875_p8 = scmp.ne.s32.totalorder (!%p874_p13), %s867_s21, 0 }
  0x4c   : > { %173 = sbr.rel (%p874_p13) target bundleno = 160 (0xa0), region = 28  ;;  %s793_s18 = sshll.u32 (!%p874_p13), %s790_s15, 3 }
  0x4d   : > { %s176_s4 = scalar_lea.sflag (!%p874_p13), [#allocation3], %s790_s15  ;;  %s179_s6 = scalar_lea.vmem (!%p874_p13), [#allocation2], %s793_s18 }
  0x53   : > { %583 = dma.done.wait (%p875_p8), %s176_s4, 128  }
  0x54   : > { %585 = vsyncadd (%p875_p8), %s176_s4, 4294967168  ;;  %s185_s5 = scalar_lea.sflag [#allocation6], %s790_s15  ;;  %s188_s7 = scalar_lea.vmem [#allocation5], %s793_s18 }
  0x55   : > { %587 = dma.done.wait (%p875_p8), %s185_s5, 128  }
  0x56   : > { %589 = vsyncadd (%p875_p8), %s185_s5, 4294967168  ;;  %v221_v0 = vld [vmem:[%s179_s6] sm:$0xff]  ;;  %v222_v1 = vld [vmem:[%s188_s7] sm:$0xff]  ;;  %s389_s21 = sshll.u32 %s608_s12, 7  ;;  %s213_s16 = scalar_lea.vmem [#allocation7], %s793_s18 }
  0x57   : > { %v225_v2 = vsub.f32 0.0, %v221_v0  ;;  %v236_v3 = vmul.f32 2.0, %v222_v1  ;;  %v228_v7 = vand.u32 2147483647, %v221_v0  ;;  %v223_v22 = vmul.f32 %v222_v1, %v221_v0  ;;  %s272_s19 = sshll.u32 %s213_s16, 4  ;;  %s812_s27 = scalar_lea.hbm %s863_s2, %s389_s21  ;;  %s814_s19 = int_to_ptr.vmem [resolvable:$true] %s272_s19 }
  0x58   : > { %s259_s28 = scalar_lea.sflag [#allocation4], %s790_s15  ;;  %s530_s29 = scalar_lea.vmem %s814_s19, 128 }
  0x59   : > { %v387_v4 = vadd.f32 -1.0, %v236_v3  ;;  %v229_v10 = vsub.f32 0.0, %v228_v7  ;;  %v224_v25 = vsub.f32 %v221_v0, %v223_v22  ;;  %v226_v26 = vmax.f32 %v225_v2, 0.0  ;;  %p531_p0 = scmp.ne.s32.totalorder %s814_s19, %s530_s29  ;;  %p876_p5 = scmp.ne.s32.totalorder %s868_s22, 0 }
  0x5a   : > { %s620_s12 = smov [#allocation7]  }
  0x5b   : > { %v238_v5 = vmul.f32 %v387_v4, %v225_v2  ;;  %v230_v11 = vmul.f32 1.442695, %v229_v10  ;;  %v227_v28 = vadd.f32 %v226_v26, %v224_v25  ;;  %p532_p7 = pnand %p531_p0, %p876_p5  ;;  %s534_s25 = sshll.u32 %s620_s12, 4  ;;  %s535_s25 = int_to_ptr.vmem [resolvable:$false] %s534_s25 }
  0x5c   : > { %s536_s26 = scalar_lea.vmem %s535_s25, 256  ;;  %p537_p10 = scmp.lt.s32.totalorder %s814_s19, %s535_s25 }
  0x5d   : > { %v241_v6 = vand.u32 2147483647, %v238_v5  ;;  %v239_v15 = vsub.f32 0.0, %v238_v5  ;;  %p533_p4 = pneg %p532_p7  ;;  %p538_p12 = scmp.lt.s32.totalorder %s536_s26, %s530_s29 }
  0x5f   : > { %v242_v8 = vsub.f32 0.0, %v241_v6  ;;  %v240_v17 = vmax.f32 %v239_v15, 0.0  ;;  %p539_p1 = por %p538_p12, %p537_p10 }
  0x61   : > { %v243_v9 = vmul.f32 1.442695, %v242_v8  ;;  %p540_p2 = pnand %p539_p1, %p533_p4 }
  0x63   : > { %460 = vpow2.f32 %v243_v9 }
  0x64   : > { %462 = vpow2.f32 %v230_v11 }
  0x6d   : > { %v461_v12 = vpop.eup %460 }
  0x6e   : > { %v245_v13 = vadd.f32 1.0, %v461_v12  ;;  %v463_v14 = vpop.eup %462 }
  0x6f   : > { %v232_v16 = vadd.f32 1.0, %v463_v14 }
  0x70   : > { %464 = vlog2.f32 %v245_v13 }
  0x71   : > { %466 = vlog2.f32 %v232_v16 }
  0x7a   : > { %v465_v18 = vpop.eup %464 }
  0x7b   : > { %v247_v19 = vmul.f32 0.6931472, %v465_v18  ;;  %v467_v27 = vpop.eup %466 }
  0x7c   : > { %v234_v29 = vmul.f32 0.6931472, %v467_v27 }
  0x7d   : > { %v248_v20 = vadd.f32 %v247_v19, %v240_v17 }
  0x7e   : > { %v235_v30 = vadd.f32 %v234_v29, %v227_v28 }
  0x7f   : > { %v249_v21 = vsub.f32 0.0, %v248_v20 }
  0x81   : > { %v250_v23 = vmul.f32 2.0, %v249_v21 }
  0x83   : > { %v251_v24 = vmul.f32 1.442695, %v250_v23 }
  0x85   : > { %468 = vpow2.f32 %v251_v24 }
  0x8f   : > { %v469_v31 = vpop.eup %468 }
  0x90   : > { %v253_v32 = vmul.f32 %v469_v31, %v235_v30 }
  0x92   : > { %257 = vst [vmem:[%s213_s16] sm:$0xff] %v253_v32 }
  0x93   : > { %543 = shalt.err (!%p540_p2)
}
  0x94   : > { %s544_s3 = scalar_lea.hbm %s812_s27, 128  ;;  %s548_s18 = scalar_lea.hbm %s863_s2, 256 }
  0x95   : > { %p545_p9 = scmp.ne.s32.totalorder %s812_s27, %s544_s3  ;;  %p549_p6 = scmp.lt.u32.totalorder %s812_s27, %s863_s2 }
  0x96   : > { %p550_p13 = scmp.lt.u32.totalorder %s548_s18, %s544_s3  ;;  %p552_p0 = scmp.lt.u32.totalorder %s544_s3, %s812_s27 }
  0x97   : > { %p546_p11 = pnand %p545_p9, %p876_p5 }
  0x98   : > { %p551_p8 = por %p550_p13, %p549_p6 }
  0x99   : > { %p547_p3 = pneg %p546_p11 }
  0x9a   : > { %p553_p7 = por %p552_p0, %p551_p8 }
  0x9c   : > { %p554_p4 = pnand %p553_p7, %p547_p3 }
  0x9e   : > { %557 = shalt.err (!%p554_p4)
}
  0x9f   : > { %396 = dma.vmem_to_hbm [thread:$0]  (%p876_p5), %s814_s19, 128, %s812_s27, %s259_s28  }
  0xa0 PF: > { %s284_s5 = sand.u32 1, %s596_s9   ;;  %p877_p10 = scmp.ne.s32.totalorder %s869_s24, 0 }
  0xa1   : > { %p878_p12 = scmp.ge.s32.totalorder %s616_s14, 2  ;;  %s285_s7 = scalar_lea.sflag [#allocation4], %s284_s5 }
  0xa3   : > { %p406_p1 = pnand %p878_p12, %p877_p10 }
  0xa5   : > { %591 = dma.done.wait (!%p406_p1), %s285_s7, 128  }
  0xa6   : > { %593 = vsyncadd (!%p406_p1), %s285_s7, 4294967168  ;;  %s21_s14 = sadd.s32 1, %s616_s14   ;;  %s879_s9 = smov %s600_s10 }
  0xa7   : > { %p18_p2 = scmp.ge.s32.totalorder %s21_s14, 4   ;;  %s880_s10 = smov %s604_s11 }
  0xa8   : > { %s881_s11 = smov %s692_s23  ;;  %s882_s12 = smov %s612_s13 }
  0xa9   : > { %s883_s13 = smov %s885_s17  ;;  %20 = sbr.rel (!%p18_p2) target bundleno = 8 (0x8), region = 90 }
  0xb0   :  { %290 = vsyncpa [#allocation3], 1 }
  0xb1   :  { %292 = vsyncpa [#allocation3 + $0x1], 1 }
  0xb2   :  { %293 = vsyncpa [#allocation6], 1 }
  0xb3   :  { %295 = vsyncpa [#allocation6 + $0x1], 1 }
  0xb4   :  { %296 = vsyncpa [#allocation4], 1 }
  0xb5   :  { %298 = vsyncpa [#allocation4 + $0x1], 1 }

</bundles_post_ra>
